<compile_context>
chip_gen: v6e
topology: v6e:2x2x1
jax: 0.10.0
libtpu: 0.0.40
codegen_flags: <defaults>
</compile_context>

<pallas_src>
import jax
import jax.numpy as jnp
import numpy as np
from jax.experimental import pallas as pl
from jax.experimental.pallas import tpu as pltpu


# --------------------------- param preparation (one-time) ---------------------------
def prepare_head_params(wp, bp, wfc, bfc):
    """One-time layout prep: reorder fc columns to [plane0 | plane1] and cast to bf16."""
    C2 = wfc.shape[1]
    C = C2 // 2
    wfc_p = jnp.concatenate([wfc[:, 0::2], wfc[:, 1::2]], axis=1)       # [H, 2C]
    bfc_p = jnp.concatenate([bfc[0::2], bfc[1::2]]).reshape(1, C2)       # [1, 2C]
    return {
        "wp": wp.astype(jnp.bfloat16),                                   # [H, H]
        "bp": bp.reshape(1, -1).astype(jnp.float32),                     # [1, H]
        "wfc": wfc_p.astype(jnp.bfloat16),                               # [H, 2C]
        "bfc": bfc_p.astype(jnp.float32),                                # [1, 2C]
    }


# --------------------------------- Pallas head ---------------------------------------
def lawformer_head(cls_h, hp, label, tb=16):
    """cls_h: [B,H] f32, hp: prepared head params, label: [B,C] i32 -> (result, loss, counts)."""
    B, H = cls_h.shape
    C2 = hp["wfc"].shape[1]
    C = C2 // 2

    num_tiles = pl.cdiv(B, tb)
    B_pad = num_tiles * tb

    cls_b = cls_h.astype(jnp.bfloat16)
    label_p = label
    if B_pad != B:
        cls_b = jnp.pad(cls_b, ((0, B_pad - B), (0, 0)))
        label_p = jnp.pad(label, ((0, B_pad - B), (0, 0)))

    def kernel(cls_ref, wp_ref, bp_ref, wfc_ref, bfc_ref, lab_ref,
               scores_ref, loss_ref, counts_ref):
        # cls_ref: [tb, H] bf16 batch tile; weights resident across the grid.
        x = cls_ref[...]

        # pooler_output = tanh(cls @ Wp + bp)   (MXU bf16 -> f32 acc, VPU bias, EUP tanh)
        pooled_f32 = jnp.tanh(
            jnp.dot(x, wp_ref[...], preferred_element_type=jnp.float32) + bp_ref[...]
        )
        pooled = pooled_f32.astype(jnp.bfloat16)

        # single fused fc matmul; columns are [plane0 | plane1]
        y = jnp.dot(pooled, wfc_ref[...], preferred_element_type=jnp.float32) + bfc_ref[...]
        scores_ref[...] = y                                   # [tb, 2C] lane-contiguous slab

        s0 = y[:, :C]                                          # result[:, :, 0]
        s1 = y[:, C:]                                          # result[:, :, 1]
        lab = lab_ref[...]                                     # [tb, C] int32 in {0, 1}

        # valid-row mask for batch padding
        row0 = pl.program_id(0) * tb
        rows = jax.lax.broadcasted_iota(jnp.int32, (tb, 1), 0) + row0
        valid = rows < B                                       # [tb, 1] bool
        validf = valid.astype(jnp.float32)

        # MultiLabelSoftmaxLoss partial: sum over valid rows/classes of -log p(label)
        m = jnp.maximum(s0, s1)
        lse = m + jnp.log(jnp.exp(s0 - m) + jnp.exp(s1 - m))
        logp_sel = jnp.where(lab == 1, s1 - lse, s0 - lse)
        part_loss = jnp.sum(-logp_sel * validf)

        # acc(): pred = (score[:,:,0] < score[:,:,1])
        pred = jnp.logical_and(s0 < s1, valid).astype(jnp.int32)
        labv = jnp.where(valid, lab, 0)
        right = jnp.sum(jnp.where(labv == 1, pred, 0))
        pre_num = jnp.sum(pred)
        actual = jnp.sum(labv)

        lane = jax.lax.broadcasted_iota(jnp.int32, (1, 128), 1)
        loss_ref[...] = jnp.where(lane == 0, part_loss, 0.0)[None]
        counts_ref[...] = (jnp.where(lane == 0, right, 0)
                           + jnp.where(lane == 1, pre_num, 0)
                           + jnp.where(lane == 2, actual, 0))[None]

    flops = 2 * B_pad * H * H + 2 * B_pad * H * C2
    transcendentals = B_pad * H + 3 * B_pad * C
    bytes_accessed = (B_pad * H * 2 + H * H * 2 + H * C2 * 2 + H * 4 + C2 * 4
                      + B_pad * C * 4 + B_pad * C2 * 4 + num_tiles * 128 * 4 * 2)

    scores, loss_part, counts_part = pl.pallas_call(
        kernel,
        out_shape=(
            jax.ShapeDtypeStruct((B_pad, C2), jnp.float32),
            jax.ShapeDtypeStruct((num_tiles, 1, 128), jnp.float32),
            jax.ShapeDtypeStruct((num_tiles, 1, 128), jnp.int32),
        ),
        grid_spec=pltpu.PrefetchScalarGridSpec(
            num_scalar_prefetch=0,
            grid=(num_tiles,),
            in_specs=[
                pl.BlockSpec((tb, H), lambda i: (i, 0)),     # cls tile (bf16)
                pl.BlockSpec((H, H), lambda i: (0, 0)),      # pooler weight (resident)
                pl.BlockSpec((1, H), lambda i: (0, 0)),      # pooler bias
                pl.BlockSpec((H, C2), lambda i: (0, 0)),     # fc weight [plane0 | plane1]
                pl.BlockSpec((1, C2), lambda i: (0, 0)),     # fc bias
                pl.BlockSpec((tb, C), lambda i: (i, 0)),     # labels tile
            ],
            out_specs=[
                pl.BlockSpec((tb, C2), lambda i: (i, 0)),        # score slab
                pl.BlockSpec((1, 1, 128), lambda i: (i, 0, 0)),  # per-tile loss partial
                pl.BlockSpec((1, 1, 128), lambda i: (i, 0, 0)),  # per-tile count partials
            ],
        ),
        compiler_params=pltpu.CompilerParams(dimension_semantics=("parallel",)),
        cost_estimate=pl.CostEstimate(flops=flops,
                                      transcendentals=transcendentals,
                                      bytes_accessed=bytes_accessed),
    )(cls_b, hp["wp"], hp["bp"], hp["wfc"], hp["bfc"], label_p)

    scores = scores[:B]
    result = jnp.stack([scores[:, :C], scores[:, C:]], axis=-1)   # [B, C, 2] == fc(bcls).view(-1,C,2)
    loss = jnp.sum(loss_part) / jnp.float32(B)
    counts = jnp.sum(counts_part, axis=(0, 1))[:3]                # [right, pre_num, actual_num]
    return result, loss, counts


# ------------------------------ model wrapper --------------------------------
def lawformer_forward(head_params, emb, data, acc_result=None):
    # TODO(synk): the real pretrained Longformer encoder (sliding-window + global
    # attention over long inputs) is not reproduced; a deterministic synthetic
    # embedding/pool stage stands in for producing the CLS hidden state.
    tok = jnp.take(emb, data["inputx"], axis=0)            # [B, S, H]
    masked = tok * data["mask"][..., None]
    glob = masked * data["gAtt"][..., None]
    cls_h = masked[:, 0, :] + 0.1 * jnp.sum(glob, axis=1)  # [B, H]

    result, loss, counts = lawformer_head(cls_h, head_params, data["label"])

    if acc_result is None:
        acc_result = {"right": jnp.int32(0), "pre_num": jnp.int32(0),
                      "actual_num": jnp.int32(0)}
    # device-side accumulation; no per-step host round-trip
    acc_result = {
        "right": acc_result["right"] + counts[0],
        "pre_num": acc_result["pre_num"] + counts[1],
        "actual_num": acc_result["actual_num"] + counts[2],
    }
    return {"loss": loss, "acc_result": acc_result, "result": result}


# ----------------------------------- main -------------------------------------
if __name__ == "__main__":
    B, S, H, C, VOCAB = 24, 16, 256, 4, 100   # small shapes (module's hidden_size is 768)

    key = jax.random.PRNGKey(0)
    k_emb, k_wp, k_bp, k_wfc, k_bfc, k_tok, k_lab = jax.random.split(key, 7)

    emb = jax.random.normal(k_emb, (VOCAB, H), jnp.float32) * 0.02
    wp = jax.random.normal(k_wp, (H, H), jnp.float32) * 0.02
    bp = jax.random.normal(k_bp, (H,), jnp.float32) * 0.02
    wfc = jax.random.normal(k_wfc, (H, 2 * C), jnp.float32) * 0.02
    bfc = jax.random.normal(k_bfc, (2 * C,), jnp.float32) * 0.02

    inputx = jax.random.randint(k_tok, (B, S), 0, VOCAB, jnp.int32)
    mask = jnp.ones((B, S), jnp.float32)
    gAtt = jnp.zeros((B, S), jnp.float32).at[:, 0].set(1.0)
    label = jax.random.randint(k_lab, (B, C), 0, 2, jnp.int32)

    data = {"inputx": inputx, "mask": mask, "gAtt": gAtt, "label": label}
    head_params = prepare_head_params(wp, bp, wfc, bfc)      # one-time layout / bf16 prep

    out = lawformer_forward(head_params, emb, data, acc_result=None)
    jax.block_until_ready(out["loss"])
    jax.block_until_ready(out["result"])

    # ---- pure-JAX reference check (same bf16-in / f32-accumulate mixed precision) ----
    tok = jnp.take(emb, inputx, axis=0)
    masked = tok * mask[..., None]
    cls_h = masked[:, 0, :] + 0.1 * jnp.sum(masked * gAtt[..., None], axis=1)
    pooled = jnp.tanh(jnp.dot(cls_h.astype(jnp.bfloat16), wp.astype(jnp.bfloat16),
                              preferred_element_type=jnp.float32) + bp)
    logits = jnp.dot(pooled.astype(jnp.bfloat16), wfc.astype(jnp.bfloat16),
                     preferred_element_type=jnp.float32) + bfc
    result_ref = logits.reshape(B, C, 2)
    lse = jax.scipy.special.logsumexp(result_ref, axis=-1)
    logp = result_ref - lse[..., None]
    logp_sel = jnp.where(label == 1, logp[..., 1], logp[..., 0])
    loss_ref = jnp.sum(-logp_sel) / B
    pred_ref = (result_ref[..., 0] < result_ref[..., 1]).astype(jnp.int32)

    np.testing.assert_allclose(np.asarray(out["result"]), np.asarray(result_ref),
                               rtol=1e-2, atol=1e-2)
    np.testing.assert_allclose(float(out["loss"]), float(loss_ref), rtol=1e-2, atol=1e-2)
    assert int(out["acc_result"]["right"]) == int(jnp.sum(pred_ref * (label == 1)))
    assert int(out["acc_result"]["pre_num"]) == int(jnp.sum(pred_ref))
    assert int(out["acc_result"]["actual_num"]) == int(jnp.sum(label))

    print("KERNEL_OK")
</pallas_src>

<mosaic_0001>
module attributes {stable_mosaic.version = 11 : i64} {
  func.func @kernel(%arg0: i32, %arg1: memref<16x256xbf16, #tpu.memory_space<vmem>>, %arg2: memref<256x256xbf16, #tpu.memory_space<vmem>>, %arg3: memref<1x256xf32, #tpu.memory_space<vmem>>, %arg4: memref<256x8xbf16, #tpu.memory_space<vmem>>, %arg5: memref<1x8xf32, #tpu.memory_space<vmem>>, %arg6: memref<16x4xi32, #tpu.memory_space<vmem>>, %arg7: memref<16x8xf32, #tpu.memory_space<vmem>>, %arg8: memref<1x1x128xf32, #tpu.memory_space<vmem>>, %arg9: memref<1x1x128xi32, #tpu.memory_space<vmem>>) attributes {dimension_semantics = [#tpu.dimension_semantics<parallel>], iteration_bounds = array<i64: 2>, scalar_prefetch = 0 : i64, scratch_operands = 0 : i64, tpu.core_type = #tpu.core_type<tc>, window_params = [{transform_indices = @transform_0, window_bounds = array<i64: 16, 256>}, {pipeline_mode = #tpu.pipeline_mode<synchronous>, transform_indices = @transform_1, window_bounds = array<i64: 256, 256>}, {pipeline_mode = #tpu.pipeline_mode<synchronous>, transform_indices = @transform_2, window_bounds = array<i64: 1, 256>}, {pipeline_mode = #tpu.pipeline_mode<synchronous>, transform_indices = @transform_3, window_bounds = array<i64: 256, 8>}, {pipeline_mode = #tpu.pipeline_mode<synchronous>, transform_indices = @transform_4, window_bounds = array<i64: 1, 8>}, {transform_indices = @transform_5, window_bounds = array<i64: 16, 4>}, {transform_indices = @transform_6, window_bounds = array<i64: 16, 8>}, {transform_indices = @transform_7, window_bounds = array<i64: 1, 1, 128>}, {transform_indices = @transform_8, window_bounds = array<i64: 1, 1, 128>}]} {
    %c0 = arith.constant 0 : index
    %c0_0 = arith.constant 0 : index
    %0 = vector.load %arg1[%c0, %c0_0] : memref<16x256xbf16, #tpu.memory_space<vmem>>, vector<16x256xbf16>
    %c0_1 = arith.constant 0 : index
    %c0_2 = arith.constant 0 : index
    %1 = vector.load %arg2[%c0_1, %c0_2] : memref<256x256xbf16, #tpu.memory_space<vmem>>, vector<256x256xbf16>
    %cst = arith.constant dense<0.000000e+00> : vector<16x256xf32>
    %2 = tpu.matmul %0, %1, %cst {dimension_numbers = #tpu.dot_dimension_numbers<[1], [0], [0], [1], [0, 0, 1, 1], [], []>} : vector<16x256xbf16>, vector<256x256xbf16>, vector<16x256xf32> -> vector<16x256xf32>
    %c0_3 = arith.constant 0 : index
    %c0_4 = arith.constant 0 : index
    %3 = vector.load %arg3[%c0_3, %c0_4] : memref<1x256xf32, #tpu.memory_space<vmem>>, vector<1x256xf32>
    %4 = vector.broadcast %3 : vector<1x256xf32> to vector<16x256xf32>
    %5 = arith.addf %2, %4 : vector<16x256xf32>
    %6 = math.tanh %5 : vector<16x256xf32>
    %7 = arith.truncf %6 : vector<16x256xf32> to vector<16x256xbf16>
    %c0_5 = arith.constant 0 : index
    %c0_6 = arith.constant 0 : index
    %8 = vector.load %arg4[%c0_5, %c0_6] : memref<256x8xbf16, #tpu.memory_space<vmem>>, vector<256x8xbf16>
    %cst_7 = arith.constant dense<0.000000e+00> : vector<16x8xf32>
    %9 = tpu.matmul %7, %8, %cst_7 {dimension_numbers = #tpu.dot_dimension_numbers<[1], [0], [0], [1], [0, 0, 1, 1], [], []>} : vector<16x256xbf16>, vector<256x8xbf16>, vector<16x8xf32> -> vector<16x8xf32>
    %c0_8 = arith.constant 0 : index
    %c0_9 = arith.constant 0 : index
    %10 = vector.load %arg5[%c0_8, %c0_9] : memref<1x8xf32, #tpu.memory_space<vmem>>, vector<1x8xf32>
    %11 = vector.broadcast %10 : vector<1x8xf32> to vector<16x8xf32>
    %12 = arith.addf %9, %11 : vector<16x8xf32>
    %c0_10 = arith.constant 0 : index
    %c0_11 = arith.constant 0 : index
    %13 = vector.load %arg7[%c0_10, %c0_11] : memref<16x8xf32, #tpu.memory_space<vmem>>, vector<16x8xf32>
    tpu.vector_store %arg7[%c0_10, %c0_11], %12 {strides = array<i32>} : memref<16x8xf32, #tpu.memory_space<vmem>>, vector<16x8xf32>,
    %14 = vector.extract_strided_slice %12 {offsets = [0, 0], sizes = [16, 4], strides = [1, 1]} : vector<16x8xf32> to vector<16x4xf32>
    %15 = vector.extract_strided_slice %12 {offsets = [0, 4], sizes = [16, 4], strides = [1, 1]} : vector<16x8xf32> to vector<16x4xf32>
    %c0_12 = arith.constant 0 : index
    %c0_13 = arith.constant 0 : index
    %16 = vector.load %arg6[%c0_12, %c0_13] : memref<16x4xi32, #tpu.memory_space<vmem>>, vector<16x4xi32>
    %c16_i32 = arith.constant 16 : i32
    %17 = arith.muli %arg0, %c16_i32 : i32
    %18 = tpu.iota {dimensions = array<i32: 0>} : vector<16x1xi32>
    %19 = vector.broadcast %17 : i32 to vector<16x1xi32>
    %20 = arith.addi %18, %19 : vector<16x1xi32>
    %c24_i32 = arith.constant 24 : i32
    %21 = vector.broadcast %c24_i32 : i32 to vector<16x1xi32>
    %22 = arith.cmpi slt, %20, %21 : vector<16x1xi32>
    %23 = arith.extui %22 : vector<16x1xi1> to vector<16x1xi32>
    %24 = arith.sitofp %23 : vector<16x1xi32> to vector<16x1xf32>
    %25 = arith.maximumf %14, %15 : vector<16x4xf32>
    %26 = arith.subf %14, %25 : vector<16x4xf32>
    %27 = math.exp %26 : vector<16x4xf32>
    %28 = arith.subf %15, %25 : vector<16x4xf32>
    %29 = math.exp %28 : vector<16x4xf32>
    %30 = arith.addf %27, %29 : vector<16x4xf32>
    %31 = math.log %30 : vector<16x4xf32>
    %32 = arith.addf %25, %31 : vector<16x4xf32>
    %c1_i32 = arith.constant 1 : i32
    %33 = vector.broadcast %c1_i32 : i32 to vector<16x4xi32>
    %34 = arith.cmpi eq, %16, %33 : vector<16x4xi32>
    %35 = arith.subf %15, %32 : vector<16x4xf32>
    %36 = arith.subf %14, %32 : vector<16x4xf32>
    %37 = arith.select %34, %35, %36 : vector<16x4xi1>, vector<16x4xf32>
    %cst_14 = arith.constant 0.000000e+00 : f32
    %38 = vector.broadcast %cst_14 : f32 to vector<16x4xf32>
    %39 = arith.subf %38, %37 : vector<16x4xf32>
    %40 = vector.broadcast %24 : vector<16x1xf32> to vector<16x4xf32>
    %41 = arith.mulf %39, %40 : vector<16x4xf32>
    %42 = vector.shape_cast %41 : vector<16x4xf32> to vector<1x16x4xf32>
    %cst_15 = arith.constant dense<0.000000e+00> : vector<1xf32>
    %43 = vector.multi_reduction <add>, %42, %cst_15 [1, 2] : vector<1x16x4xf32> to vector<1xf32>
    %44 = vector.shape_cast %43 : vector<1xf32> to vector<1x1x1xf32>
    %45 = vector.extract %44[0, 0, 0] : f32 from vector<1x1x1xf32>
    %46 = arith.cmpf olt, %14, %15 : vector<16x4xf32>
    %47 = vector.broadcast %22 : vector<16x1xi1> to vector<16x4xi1>
    %48 = arith.andi %46, %47 : vector<16x4xi1>
    %49 = arith.extui %48 : vector<16x4xi1> to vector<16x4xi32>
    %c0_i32 = arith.constant 0 : i32
    %50 = vector.shape_cast %22 : vector<16x1xi1> to vector<16x1xi1>
    %51 = vector.broadcast %50 : vector<16x1xi1> to vector<16x4xi1>
    %52 = vector.broadcast %c0_i32 : i32 to vector<16x4xi32>
    %53 = arith.select %51, %16, %52 : vector<16x4xi1>, vector<16x4xi32>
    %c1_i32_16 = arith.constant 1 : i32
    %54 = vector.broadcast %c1_i32_16 : i32 to vector<16x4xi32>
    %55 = arith.cmpi eq, %53, %54 : vector<16x4xi32>
    %c0_i32_17 = arith.constant 0 : i32
    %56 = vector.broadcast %c0_i32_17 : i32 to vector<16x4xi32>
    %57 = arith.select %55, %49, %56 : vector<16x4xi1>, vector<16x4xi32>
    %58 = vector.shape_cast %57 : vector<16x4xi32> to vector<1x16x4xi32>
    %cst_18 = arith.constant dense<0> : vector<1xi32>
    %59 = vector.multi_reduction <add>, %58, %cst_18 [1, 2] : vector<1x16x4xi32> to vector<1xi32>
    %60 = vector.shape_cast %59 : vector<1xi32> to vector<1x1x1xi32>
    %61 = vector.extract %60[0, 0, 0] : i32 from vector<1x1x1xi32>
    %62 = vector.shape_cast %49 : vector<16x4xi32> to vector<1x16x4xi32>
    %cst_19 = arith.constant dense<0> : vector<1xi32>
    %63 = vector.multi_reduction <add>, %62, %cst_19 [1, 2] : vector<1x16x4xi32> to vector<1xi32>
    %64 = vector.shape_cast %63 : vector<1xi32> to vector<1x1x1xi32>
    %65 = vector.extract %64[0, 0, 0] : i32 from vector<1x1x1xi32>
    %66 = vector.shape_cast %53 : vector<16x4xi32> to vector<1x16x4xi32>
    %cst_20 = arith.constant dense<0> : vector<1xi32>
    %67 = vector.multi_reduction <add>, %66, %cst_20 [1, 2] : vector<1x16x4xi32> to vector<1xi32>
    %68 = vector.shape_cast %67 : vector<1xi32> to vector<1x1x1xi32>
    %69 = vector.extract %68[0, 0, 0] : i32 from vector<1x1x1xi32>
    %70 = tpu.iota {dimensions = array<i32: 1>} : vector<1x128xi32>
    %c0_i32_21 = arith.constant 0 : i32
    %71 = vector.broadcast %c0_i32_21 : i32 to vector<1x128xi32>
    %72 = arith.cmpi eq, %70, %71 : vector<1x128xi32>
    %cst_22 = arith.constant 0.000000e+00 : f32
    %73 = vector.broadcast %45 : f32 to vector<1x128xf32>
    %74 = vector.broadcast %cst_22 : f32 to vector<1x128xf32>
    %75 = arith.select %72, %73, %74 : vector<1x128xi1>, vector<1x128xf32>
    %76 = vector.shape_cast %75 : vector<1x128xf32> to vector<1x1x128xf32>
    %c0_23 = arith.constant 0 : index
    %c0_24 = arith.constant 0 : index
    %c0_25 = arith.constant 0 : index
    %77 = vector.load %arg8[%c0_23, %c0_24, %c0_25] : memref<1x1x128xf32, #tpu.memory_space<vmem>>, vector<1x1x128xf32>
    tpu.vector_store %arg8[%c0_23, %c0_24, %c0_25], %76 {strides = array<i32>} : memref<1x1x128xf32, #tpu.memory_space<vmem>>, vector<1x1x128xf32>,
    %c0_i32_26 = arith.constant 0 : i32
    %78 = vector.broadcast %c0_i32_26 : i32 to vector<1x128xi32>
    %79 = arith.cmpi eq, %70, %78 : vector<1x128xi32>
    %c0_i32_27 = arith.constant 0 : i32
    %80 = vector.broadcast %61 : i32 to vector<1x128xi32>
    %81 = vector.broadcast %c0_i32_27 : i32 to vector<1x128xi32>
    %82 = arith.select %79, %80, %81 : vector<1x128xi1>, vector<1x128xi32>
    %c1_i32_28 = arith.constant 1 : i32
    %83 = vector.broadcast %c1_i32_28 : i32 to vector<1x128xi32>
    %84 = arith.cmpi eq, %70, %83 : vector<1x128xi32>
    %c0_i32_29 = arith.constant 0 : i32
    %85 = vector.broadcast %65 : i32 to vector<1x128xi32>
    %86 = vector.broadcast %c0_i32_29 : i32 to vector<1x128xi32>
    %87 = arith.select %84, %85, %86 : vector<1x128xi1>, vector<1x128xi32>
    %88 = arith.addi %82, %87 : vector<1x128xi32>
    %c2_i32 = arith.constant 2 : i32
    %89 = vector.broadcast %c2_i32 : i32 to vector<1x128xi32>
    %90 = arith.cmpi eq, %70, %89 : vector<1x128xi32>
    %c0_i32_30 = arith.constant 0 : i32
    %91 = vector.broadcast %69 : i32 to vector<1x128xi32>
    %92 = vector.broadcast %c0_i32_30 : i32 to vector<1x128xi32>
    %93 = arith.select %90, %91, %92 : vector<1x128xi1>, vector<1x128xi32>
    %94 = arith.addi %88, %93 : vector<1x128xi32>
    %95 = vector.shape_cast %94 : vector<1x128xi32> to vector<1x1x128xi32>
    %c0_31 = arith.constant 0 : index
    %c0_32 = arith.constant 0 : index
    %c0_33 = arith.constant 0 : index
    %96 = vector.load %arg9[%c0_31, %c0_32, %c0_33] : memref<1x1x128xi32, #tpu.memory_space<vmem>>, vector<1x1x128xi32>
    tpu.vector_store %arg9[%c0_31, %c0_32, %c0_33], %95 {strides = array<i32>} : memref<1x1x128xi32, #tpu.memory_space<vmem>>, vector<1x1x128xi32>,
    return
  }
  func.func @transform_0(%arg0: i32) -> (i32, i32) {
    %c0_i32 = arith.constant 0 : i32
    %c0_i32_0 = arith.constant 0 : i32
    return %arg0, %c0_i32 : i32, i32
  }
  func.func @transform_1(%arg0: i32) -> (i32, i32) {
    %c0_i32 = arith.constant 0 : i32
    %c0_i32_0 = arith.constant 0 : i32
    %c0_i32_1 = arith.constant 0 : i32
    return %c0_i32, %c0_i32_0 : i32, i32
  }
  func.func @transform_2(%arg0: i32) -> (i32, i32) {
    %c0_i32 = arith.constant 0 : i32
    %c0_i32_0 = arith.constant 0 : i32
    %c0_i32_1 = arith.constant 0 : i32
    return %c0_i32, %c0_i32_0 : i32, i32
  }
  func.func @transform_3(%arg0: i32) -> (i32, i32) {
    %c0_i32 = arith.constant 0 : i32
    %c0_i32_0 = arith.constant 0 : i32
    %c0_i32_1 = arith.constant 0 : i32
    return %c0_i32, %c0_i32_0 : i32, i32
  }
  func.func @transform_4(%arg0: i32) -> (i32, i32) {
    %c0_i32 = arith.constant 0 : i32
    %c0_i32_0 = arith.constant 0 : i32
    %c0_i32_1 = arith.constant 0 : i32
    return %c0_i32, %c0_i32_0 : i32, i32
  }
  func.func @transform_5(%arg0: i32) -> (i32, i32) {
    %c0_i32 = arith.constant 0 : i32
    %c0_i32_0 = arith.constant 0 : i32
    return %arg0, %c0_i32 : i32, i32
  }
  func.func @transform_6(%arg0: i32) -> (i32, i32) {
    %c0_i32 = arith.constant 0 : i32
    %c0_i32_0 = arith.constant 0 : i32
    return %arg0, %c0_i32 : i32, i32
  }
  func.func @transform_7(%arg0: i32) -> (i32, i32, i32) {
    %c0_i32 = arith.constant 0 : i32
    %c0_i32_0 = arith.constant 0 : i32
    %c0_i32_1 = arith.constant 0 : i32
    return %arg0, %c0_i32, %c0_i32_0 : i32, i32, i32
  }
  func.func @transform_8(%arg0: i32) -> (i32, i32, i32) {
    %c0_i32 = arith.constant 0 : i32
    %c0_i32_0 = arith.constant 0 : i32
    %c0_i32_1 = arith.constant 0 : i32
    return %arg0, %c0_i32, %c0_i32_0 : i32, i32, i32
  }
}

</mosaic_0001>

<bundles_post_ra>
// kernel: tpu_custom_call.1
= control target key start
LH: loop header
LB: loop body
LE: loop exit
PB: predicated region body
PF: predicated region fallthrough
CT: control target
= control target key end

     0   :  { %s1891_s0 = inlined_call_operand.vmem [shape: bf16[32,256], index: 0, kind: input, shape index: {}]   ;;  %s1892_s1 = inlined_call_operand.hbm [shape: bf16[256,256], index: 1, kind: input, shape index: {}]   ;;  %s1893_s2 = inlined_call_operand.vmem [shape: f32[1,256], index: 2, kind: input, shape index: {}]   ;;  %s1894_s3 = inlined_call_operand.vmem [shape: bf16[256,8], index: 3, kind: input, shape index: {}]   ;;  %s1895_s4 = inlined_call_operand.vmem [shape: f32[1,8], index: 4, kind: input, shape index: {}]   ;;  %s1896_s5 = inlined_call_operand.vmem [shape: s32[32,4], index: 5, kind: input, shape index: {}]   ;;  %s1897_s6 = inlined_call_operand.vmem [shape: f32[32,8], index: 6, kind: output, shape index: {0}]   ;;  %s1898_s7 = inlined_call_operand.hbm [shape: f32[2,1,128], index: 7, kind: output, shape index: {1}]   ;;  %s1899_s8 = inlined_call_operand.hbm [shape: s32[2,1,128], index: 8, kind: output, shape index: {2}]  }
   0x1   :  { %1901 = sst [smem:[#allocation11_spill]] %s1891_s0 }
   0x2   :  { %14 = vsyncpa [#allocation3], 0 }
   0x3   :  { %15 = vsyncpa [#allocation4], 0 }
   0x4   :  { %17 = vsyncpa [#allocation4 + $0x1], 0 }
   0x5   :  { %18 = vsyncpa [#allocation7], 0 }
   0x6   :  { %20 = vsyncpa [#allocation7 + $0x1], 0  ;;  %s1609_s27 = smov 0   ;;  %s1611_s28 = smov 0  }
   0x7   :  { %s1613_s29 = smov 0   ;;  %s1615_s30 = smov 0  }
   0x8 LB: > { %s1630_s9 = sadd.s32 4294967295, %s1553_s30   ;;  %s1183_s10 = sadd.s32 4294967294, %s1553_s30   ;;  %s1553_s30 = sphi %s1615_s30, %s1911_s30   ;;  %s1549_s29 = sphi %s1613_s29, %s1910_s29   ;;  %s1545_s28 = sphi %s1611_s28, %s1909_s28   ;;  %s1541_s27 = sphi %s1609_s27, %s1908_s27  }
   0x9   : > { %s1634_s11 = sadd.s32 1, %s1553_s30   ;;  %s195_s12 = sadd.s32 1, %s1549_s29 }
   0xa   : > { %s192_s13 = ssub.s32 %s1553_s30, %s1634_s11  ;;  %p205_p0 = scmp.ne.s32.totalorder %s1549_s29, %s1545_s28 }
   0xb   : > { %p193_p1 = scmp.eq.s32.totalorder %s192_s13, 0  ;;  %p206_p2 = scmp.eq.s32.totalorder %s1630_s9, 1 }
   0xc   : > { %p211_p3 = scmp.ne.s32.totalorder %s1545_s28, %s1541_s27  ;;  %p212_p4 = scmp.eq.s32.totalorder %s1183_s10, 1 }
   0xd   : > { %s1645_s14 = scalar_select %p193_p1, %s1549_s29, %s195_s12  }
   0xe   : > { %p1647_p5 = por %p206_p2, %p205_p0  ;;  %p1651_p6 = por %p212_p4, %p211_p3 }
   0xf   : > { %p1184_p7 = scmp.ge.s32.totalorder %s1553_s30, 1  ;;  %p245_p8 = scmp.lt.s32.totalorder %s1553_s30, 3 }
  0x10   : > { %s1903_s16 = scalar_select %p1651_p6, 1, 0 }
  0x11   : > { %p1304_p9 = scmp.eq.s32.totalorder %s1630_s9, 0  ;;  %p1658_p10 = pnand %p1184_p7, %p245_p8 }
  0x12   : > { %s1555_s18 = smov [#allocation2]  }
  0x13   : > { %s257_s19 = sshll.u32 %s1555_s18, 4  ;;  %p1293_p11 = pneg %p1658_p10  ;;  %s258_s19 = int_to_ptr.vmem [resolvable:$true] %s257_s19 }
  0x14   : > { %s1444_s20 = scalar_lea.vmem %s258_s19, 4096  ;;  %p1452_p3 = scmp.lt.s32.totalorder %s258_s19, %s258_s19 }
  0x15   : > { %p1294_p12 = pnand %p1304_p9, %p1293_p11  ;;  %p1445_p0 = scmp.ne.s32.totalorder %s258_s19, %s1444_s20 }
  0x16   : > { %p1453_p4 = scmp.lt.s32.totalorder %s1444_s20, %s1444_s20 }
  0x17   : > { %p1435_p13 = pneg %p1294_p12 }
  0x18   : > { %p1454_p6 = por %p1453_p4, %p1452_p3 }
  0x19   : > { %p1447_p1 = pnand %p1445_p0, %p1435_p13 }
  0x1b   : > { %p1448_p2 = pneg %p1447_p1 }
  0x1d   : > { %p1455_p7 = pnand %p1454_p6, %p1448_p2 }
  0x1f   : > { %1458 = shalt.err (!%p1455_p7)
}
  0x20   : > { %s1556_s21 = smov 128   ;;  %s1557_s22 = smov 8  }
  0x21   : > { %1296 = dma.hbm_to_vmem [thread:$0]  (!%p1294_p12), %s1892_s1, 4096, %s258_s19, [#allocation3], %s1556_s21, %s1556_s21, %s1557_s22  }
  0x22   : > { %301 = sbr.rel (%p1658_p10) target bundleno = 1397 (0x575), region = 44 }
  0x27   : > { %1528 = dma.done.wait (%p1304_p9), [#allocation3], 4096  }
  0x28   : > { %1530 = vsyncadd (%p1304_p9), [#allocation3], 4294963200  ;;  %v1346_v0 = vld [vmem:[#allocation2 + $0x74] ss:$8 sps:$4 sm:$0xff]   ;;  %v1348_v1 = vld [vmem:[#allocation2 + $0x70] ss:$8 sps:$4 sm:$0xff]   ;;  %v405_v50 = vlaneseq }
  0x29   : > { %585 = vmatprep.subr.bf16.mxu0 %v1346_v0  ;;  %v1349_v2 = vld [vmem:[#allocation2 + $0x64] ss:$8 sps:$4 sm:$0xff]   ;;  %v1351_v3 = vld [vmem:[#allocation2 + $0x60] ss:$8 sps:$4 sm:$0xff]   ;;  %v1352_v4 = vld [vmem:[#allocation2 + $0x54] ss:$8 sps:$4 sm:$0xff]  }
  0x2a   : > { %586 = vmatpush1.bf16.msra.mxu0 %v1348_v1  ;;  %s1189_s25 = sshll.u32 %s1630_s9, 1  ;;  %v1354_v5 = vld [vmem:[#allocation2 + $0x50] ss:$8 sps:$4 sm:$0xff]   ;;  %v1355_v6 = vld [vmem:[#allocation2 + $0x44] ss:$8 sps:$4 sm:$0xff]   ;;  %s1905_s0 = sld [smem:[#allocation11_spill]] }
  0x2b   : > { %587 = vmatprep.subr.bf16.mxu0 %v1349_v2  ;;  %p350_p6 = scmp.lt.s32.totalorder %s1189_s25, 3  ;;  %v1357_v7 = vld [vmem:[#allocation2 + $0x40] ss:$8 sps:$4 sm:$0xff]   ;;  %v1358_v8 = vld [vmem:[#allocation2 + $0x34] ss:$8 sps:$4 sm:$0xff]   ;;  %v1735_v51 = vshrl.u32 %v405_v50, 7 }
  0x2c   : > { %v1360_v9 = vld [vmem:[#allocation2 + $0x30] ss:$8 sps:$4 sm:$0xff]   ;;  %v1361_v10 = vld [vmem:[#allocation2 + $0x24] ss:$8 sps:$4 sm:$0xff]   ;;  %v1363_v11 = vld [vmem:[#allocation2 + $0x20] ss:$8 sps:$4 sm:$0xff]  }
  0x2d   : > { %s1913_s25 = smov (!%p350_p6, %s1189_s25), 3  ;;  %v1364_v12 = vld [vmem:[#allocation2 + $0x14] ss:$8 sps:$4 sm:$0xff]   ;;  %v1366_v13 = vld [vmem:[#allocation2 + $0x10] ss:$8 sps:$4 sm:$0xff]   ;;  %v1401_v38 = vld [vmem:[%s1894_s3 + $0x68] sm:$0xff]  }
  0x2e   : > { %588 = vmatpush1.bf16.msra.mxu0 %v1351_v3  ;;  %s1676_s26 = sshll.u32 %s1913_s25, 3  ;;  %v1367_v15 = vld [vmem:[#allocation2 + $0x4] ss:$8 sps:$4 sm:$0xff]   ;;  %v1397_v16 = vld [vmem:[%s1894_s3 + $0x78] sm:$0xff]   ;;  %v1369_v17 = vld [vmem:[#allocation2] ss:$8 sps:$4 sm:$0xff]  }
  0x2f   : > { %589 = vmatprep.subr.bf16.mxu0 %v1352_v4  ;;  %v1398_v18 = vld [vmem:[%s1894_s3 + $0x38] sm:$0xff]   ;;  %1255 = vmatprep.subr.bf16.mxu1 %v1397_v16  ;;  %v1399_v19 = vld [vmem:[%s1894_s3 + $0x70] sm:$0xff]   ;;  %v1373_v23 = vld [vmem:[#allocation2 + $0xe4] ss:$8 sps:$4 sm:$0xff]   ;;  %v411_v52 = vsub.s32 1, %v1735_v51  ;;  %v407_v54 = vsub.s32 0, %v1735_v51  ;;  %s366_s20 = scalar_lea.vmem %s1897_s6, %s1676_s26 }
  0x30   : > { %s1682_s13 = scalar_lea.vmem %s1905_s0, %s1676_s26  ;;  %v1370_v20 = vld [vmem:[#allocation2 + $0xf4] ss:$8 sps:$4 sm:$0xff]   ;;  %1256 = vmatpush3.bf16.msra.mxu1 %v1398_v18  ;;  %v1372_v22 = vld [vmem:[#allocation2 + $0xf0] ss:$8 sps:$4 sm:$0xff]   ;;  %v1375_v24 = vld [vmem:[#allocation2 + $0xe0] ss:$8 sps:$4 sm:$0xff]  }
  0x31   : > { %v1396_v14 = vld [vmem:[%s1682_s13 + $0x4] ss:$8 sps:$4 sm:$0xff]   ;;  %v1400_v21 = vld [vmem:[%s1894_s3 + $0x30] sm:$0xff]   ;;  %1257 = vmatprep.subr.bf16.mxu1 %v1399_v19  ;;  %v1381_v28 = vld [vmem:[#allocation2 + $0xc0] ss:$8 sps:$4 sm:$0xff]   ;;  %vm810_vm0 = vcmask 64512  }
  0x32   : > { %590 = vmatpush1.bf16.msra.mxu0 %v1354_v5  ;;  %617 = vmatprep.mubr.bf16.mxu0 %v1396_v14  ;;  %v1376_v25 = vld [vmem:[#allocation2 + $0xd4] ss:$8 sps:$4 sm:$0xff]   ;;  %v1378_v26 = vld [vmem:[#allocation2 + $0xd0] ss:$8 sps:$4 sm:$0xff]   ;;  %v1379_v27 = vld [vmem:[#allocation2 + $0xc4] ss:$8 sps:$4 sm:$0xff]  }
  0x33   : > { %591 = vmatprep.subr.bf16.mxu0 %v1355_v6  ;;  %v1382_v29 = vld [vmem:[#allocation2 + $0xb4] ss:$8 sps:$4 sm:$0xff]   ;;  %v1384_v30 = vld [vmem:[#allocation2 + $0xb0] ss:$8 sps:$4 sm:$0xff]   ;;  %v1385_v31 = vld [vmem:[#allocation2 + $0xa4] ss:$8 sps:$4 sm:$0xff]  }
  0x34   : > { %1258 = vmatpush3.bf16.msra.mxu1 %v1400_v21  ;;  %v1387_v32 = vld [vmem:[#allocation2 + $0xa0] ss:$8 sps:$4 sm:$0xff]   ;;  %v1388_v33 = vld [vmem:[#allocation2 + $0x94] ss:$8 sps:$4 sm:$0xff]   ;;  %v1390_v34 = vld [vmem:[#allocation2 + $0x90] ss:$8 sps:$4 sm:$0xff]  }
  0x35   : > { %v1391_v35 = vld [vmem:[#allocation2 + $0x84] ss:$8 sps:$4 sm:$0xff]   ;;  %v1393_v36 = vld [vmem:[#allocation2 + $0x80] ss:$8 sps:$4 sm:$0xff]   ;;  %1259 = vmatprep.subr.bf16.mxu1 %v1401_v38  ;;  %v1405_v42 = vld [vmem:[%s1894_s3 + $0x58] sm:$0xff]   ;;  %s1558_s21 = smov 124  }
  0x36   : > { %592 = vmatpush1.bf16.msra.mxu0 %v1357_v7  ;;  %v1394_v37 = vld [vmem:[%s1682_s13] ss:$8 sps:$4 sm:$0xff]   ;;  %v1406_v43 = vld [vmem:[%s1894_s3 + $0x18] sm:$0xff]   ;;  %v1407_v44 = vld [vmem:[%s1894_s3 + $0x50] sm:$0xff]   ;;  %s1559_s13 = smov 4   ;;  %s1778_s22 = sshll.u32 %s1630_s9, 4 }
  0x37   : > { %593 = vmatprep.subr.bf16.mxu0 %v1358_v8  ;;  %v1402_v39 = vld [vmem:[%s1894_s3 + $0x28] sm:$0xff]   ;;  %v1403_v40 = vld [vmem:[%s1894_s3 + $0x60] sm:$0xff]   ;;  %v1408_v45 = vld [vmem:[%s1894_s3 + $0x10] sm:$0xff]   ;;  %s360_s9 = scalar_lea.vmem %s1896_s5, %s1676_s26  ;;  %vm902_vm9 = vcmask 31744   ;;  %s1812_s26 = sand.u32 1, %s1545_s28  }
  0x38   : > { %1260 = vmatpush3.bf16.msra.mxu1 %v1402_v39  ;;  %v1404_v41 = vld [vmem:[%s1894_s3 + $0x20] sm:$0xff]   ;;  %v1409_v46 = vld [vmem:[%s1894_s3 + $0x48] sm:$0xff]   ;;  %s342_s25 = scalar_lea.vmem [#allocation5], %s1812_s26  ;;  %s1820_s18 = scalar_lea.hbm %s1898_s7, %s1778_s22 }
  0x39   : > { %1261 = vmatprep.subr.bf16.mxu1 %v1403_v40  ;;  %v1410_v47 = vld [vmem:[%s1894_s3 + $0x8] sm:$0xff]   ;;  %v1411_v48 = vld [vmem:[%s1894_s3 + $0x40] sm:$0xff]   ;;  %s1038_s10 = sshll.u32 %s342_s25, 4  ;;  %s1900_s23 = scalar_lea.vmem [#allocation6], %s1812_s26  ;;  %s1822_s10 = int_to_ptr.vmem [resolvable:$true] %s1038_s10 }
  0x3a   : > { %594 = vmatpush1.bf16.msra.mxu0 %v1360_v9  ;;  %v1412_v49 = vld [vmem:[%s1894_s3] sm:$0xff]   ;;  %s1829_s24 = sshll.u32 %s1900_s23, 4  ;;  %s1459_s12 = scalar_lea.vmem %s1822_s10, 16  ;;  %s1052_s24 = int_to_ptr.vmem [resolvable:$true] %s1829_s24 }
  0x3b   : > { %595 = vmatprep.subr.bf16.mxu0 %v1361_v10  ;;  %v403_v53 = vld [vmem:[%s1893_s2] sm:$0x3]  ;;  %p1460_p8 = scmp.ne.s32.totalorder %s1822_s10, %s1459_s12 }
  0x3c   : > { %1262 = vmatpush3.bf16.msra.mxu1 %v1404_v41  ;;  %v412_v55 = vrot.slane %v403_v53, %v411_v52  ;;  %v408_v57 = vrot.slane %v403_v53, %v407_v54  ;;  %v1230_v8 = vld [vmem:[%s1895_s4] ss:$0 sm:$0xff]  ;;  %v814_v54 = vld [vmem:[%s360_s9 + $0x8] sm:$0xff] }
  0x3d   : > { %1263 = vmatprep.subr.bf16.mxu1 %v1405_v42  ;;  %vm875_vm11 = vcmp.eq.s32.totalorder %v814_v54, 1  ;;  %p1461_p9 = pnand %p1460_p8, %p1647_p5 }
  0x3e   : > { %596 = vmatpush1.bf16.msra.mxu0 %v1363_v11 }
  0x3f   : > { %597 = vmatprep.subr.bf16.mxu0 %v1364_v12  ;;  %p1462_p10 = pneg %p1461_p9 }
  0x40   : > { %1264 = vmatpush3.bf16.msra.mxu1 %v1406_v43 }
  0x41   : > { %1265 = vmatprep.subr.bf16.mxu1 %v1407_v44 }
  0x42   : > { %598 = vmatpush1.bf16.msra.mxu0 %v1366_v13 }
  0x43   : > { %599 = vmatprep.subr.bf16.mxu0 %v1367_v15 }
  0x44   : > { %1266 = vmatpush3.bf16.msra.mxu1 %v1408_v45  ;;  %v818_v45 = vadd.s32 8, %v1735_v51 }
  0x45   : > { %1267 = vmatprep.subr.bf16.mxu1 %v1409_v46 }
  0x46   : > { %600 = vmatpush1.bf16.msra.mxu0 %v1369_v17 }
  0x47   : > { %601 = vmatprep.subr.bf16.mxu0 %v1370_v20 }
  0x48   : > { %1268 = vmatpush3.bf16.msra.mxu1 %v1410_v47  ;;  %v819_v47 = vstv %s1778_s22 }
  0x49   : > { %1269 = vmatprep.subr.bf16.mxu1 %v1411_v48  ;;  %v820_v53 = vadd.s32 %v819_v47, %v1735_v51 }
  0x4a   : > { %602 = vmatpush2.bf16.msra.mxu0 %v1372_v22 }
  0x4b   : > { %603 = vmatprep.subr.bf16.mxu0 %v1373_v23  ;;  %vm822_vm3 = vcmp.lt.s32.totalorder %v820_v53, 24 }
  0x4c   : > { %1270 = vmatpush3.bf16.msra.mxu1 %v1412_v49  ;;  %v821_v49 = vadd.s32 %v819_v47, %v818_v45 }
  0x4e   : > { %604 = vmatpush2.bf16.msra.mxu0 %v1375_v24  ;;  %vm823_vm1 = vcmp.lt.s32.totalorder %v821_v49, 24 }
  0x4f   : > { %605 = vmatprep.subr.bf16.mxu0 %v1376_v25 }
  0x52   : > { %606 = vmatpush2.bf16.msra.mxu0 %v1378_v26 }
  0x53   : > { %607 = vmatprep.subr.bf16.mxu0 %v1379_v27 }
  0x56   : > { %608 = vmatpush2.bf16.msra.mxu0 %v1381_v28 }
  0x57   : > { %609 = vmatprep.subr.bf16.mxu0 %v1382_v29 }
  0x5a   : > { %610 = vmatpush2.bf16.msra.mxu0 %v1384_v30 }
  0x5b   : > { %611 = vmatprep.subr.bf16.mxu0 %v1385_v31 }
  0x5e   : > { %612 = vmatpush2.bf16.msra.mxu0 %v1387_v32 }
  0x5f   : > { %613 = vmatprep.subr.bf16.mxu0 %v1388_v33 }
  0x62   : > { %614 = vmatpush2.bf16.msra.mxu0 %v1390_v34 }
  0x63   : > { %615 = vmatprep.subr.bf16.mxu0 %v1391_v35 }
  0x66   : > { %616 = vmatpush2.bf16.msra.mxu0 %v1393_v36 }
  0x69   : > { %618 = vmatmul.mubr.bf16.vlgmr.msra.gmra.mxu0 %v1394_v37 }
 0x129   : > { %v619_v56 = vpop.f32.mrf.mxu0 }
 0x12a   : > { %v620_v62 = vadd.f32 %v619_v56, %v408_v57  ;;  %v924_v56 = vsel %vm823_vm1, %v814_v54, 0 }
 0x12b   : > { %v621_v58 = vpop.f32.mrf.mxu0  ;;  %vm926_vm7 = vcmp.eq.s32.totalorder %v924_v56, 1 }
 0x12c   : > { %v622_v59 = vadd.f32 %v621_v58, %v412_v55 }
 0x12d   : > { %v623_v60 = vpop.f32.mrf.mxu0 }
 0x12e   : > { %v624_v61 = vadd.f32 %v623_v60, %v408_v57  ;;  %1413 = vtanh.f32 %v622_v59  ;;  %v1560_v57 = vmov 0  }
 0x12f   : > { %v625_v63 = vpop.f32.mrf.mxu0 }
 0x130   : > { %v626_v0 = vadd.f32 %v625_v63, %v412_v55  ;;  %1415 = vtanh.f32 %v624_v61  ;;  %v813_v55 = vld [vmem:[%s360_s9] sm:$0xff]  ;;  %s1018_s9 = scalar_lea.sflag [#allocation4], %s1812_s26 }
 0x131   : > { %v923_v51 = vsel %vm822_vm3, %v813_v55, 0  ;;  %vm874_vm10 = vcmp.eq.s32.totalorder %v813_v55, 1 }
 0x132   : > { %1417 = vtanh.f32 %v626_v0  ;;  %vm925_vm8 = vcmp.eq.s32.totalorder %v923_v51, 1 }
 0x133   : > { %1419 = vtanh.f32 %v620_v62 }
 0x13b   : > { %v1414_v1 = vpop.eup %1413 }
 0x13d   : > { %v1416_v2 = vpop.eup %1415 }
 0x13f   : > { %v1418_v3 = vpop.eup %1417 }
 0x140   : > { %v1420_v4 = vpop.eup %1419  ;;  %v633_v5 = vpack.c.bf16 %v1418_v3, %v1414_v1 }
 0x141   : > { %v632_v6 = vpack.c.bf16 %v1416_v2, %v1420_v4 }
 0x142   : > { %801 = vmatprep.mubr.bf16.mxu1 %v633_v5 }
 0x143   : > { %802 = vmatmul.mubr.bf16.vlgmr.msra.gmra.mxu1 %v632_v6 }
 0x203   : > { %v1271_v7 = vpop.f32.mrf.mxu1 }
 0x205   : > { %v1272_v9 = vpop.f32.mrf.mxu1 }
 0x206   : > { %v1273_v10 = vadd.f32 %v1272_v9, %v1271_v7  ;;  %v973_v7 = vsel %vm902_vm9, %v923_v51, 0 }
 0x207   : > { %v1274_v11 = vpop.f32.mrf.mxu1 }
 0x208   : > { %v1749_v12 = vadd.f32 %v1273_v10, %v1230_v8 }
 0x209   : > { %v1275_v13 = vpop.f32.mrf.mxu1 }
 0x20a   : > { %811 = vst.msk [vmem:[%s366_s20] sm:$0xff] %vm810_vm0, %v1749_v12  ;;  %v1276_v14 = vadd.f32 %v1275_v13, %v1274_v11  ;;  %830 = vrot.lane.b32.xlu0 %v1749_v12, %s1558_s21 }
 0x20c   : > { %v1754_v15 = vadd.f32 %v1276_v14, %v1230_v8  ;;  %v974_v8 = vsel %vm902_vm9, %v924_v56, 0 }
 0x20d   : > { %v975_v9 = vadd.s32 %v974_v8, %v973_v7 }
 0x20e   : > { %812 = vst.msk [vmem:[%s366_s20 + $0x8] sm:$0xff] %vm810_vm0, %v1754_v15  ;;  %832 = vrot.lane.b32.xlu0 %v1754_v15, %s1558_s21 }
 0x20f   : > { %v976_v14 = vand.u32 65535, %v975_v9 }
 0x27c   : > { %v831_v16 = vpop.permute.xlu0 %830 }
 0x27d   : > { %v836_v17 = vmax.f32 %v1749_v12, %v831_v16  ;;  %vm915_vm4 = vcmp.lt.f32.partialorder %v1749_v12, %v831_v16  ;;  %v977_v16 = vshrl.u32 %v975_v9, 16 }
 0x27e   : > { %vm919_vm6 = vmand %vm915_vm4, %vm822_vm3 }
 0x27f   : > { %846 = vrot.lane.b32.xlu1 %v836_v17, %s1559_s13  ;;  %v838_v28 = vsub.f32 %v1749_v12, %v836_v17  ;;  %v921_v59 = vsel %vm919_vm6, 1, %v1560_v57 }
 0x280   : > { %v833_v18 = vpop.permute.xlu0 %832  ;;  %v927_v61 = vsel %vm925_vm8, %v921_v59, 0  ;;  %v951_v3 = vsel %vm902_vm9, %v921_v59, 0 }
 0x281   : > { %v837_v19 = vmax.f32 %v1754_v15, %v833_v18  ;;  %v840_v29 = vmul.f32 1.442695, %v838_v28  ;;  %vm916_vm2 = vcmp.lt.f32.partialorder %v1754_v15, %v833_v18  ;;  %v929_v63 = vsel %vm902_vm9, %v927_v61, 0 }
 0x282   : > { %vm920_vm5 = vmand %vm916_vm2, %vm823_vm1 }
 0x283   : > { %848 = vrot.lane.b32.xlu1 %v837_v19, %s1559_s13  ;;  %v839_v30 = vsub.f32 %v1754_v15, %v837_v19  ;;  %v922_v58 = vsel %vm920_vm5, 1, %v1560_v57 }
 0x284   : > { %v928_v60 = vsel %vm926_vm7, %v922_v58, 0  ;;  %v952_v1 = vsel %vm902_vm9, %v922_v58, 0 }
 0x285   : > { %v842_v31 = vmul.f32 1.442695, %v839_v30  ;;  %v930_v62 = vsel %vm902_vm9, %v928_v60, 0  ;;  %v953_v4 = vadd.s32 %v952_v1, %v951_v3 }
 0x286   : > { %v931_v0 = vadd.s32 %v930_v62, %v929_v63 }
 0x287   : > { %v954_v11 = vand.u32 65535, %v953_v4  ;;  %v955_v13 = vshrl.u32 %v953_v4, 16 }
 0x288   : > { %v933_v2 = vshrl.u32 %v931_v0, 16  ;;  %v932_v6 = vand.u32 65535, %v931_v0 }
 0x289   : > { %v957_v18 = vcvt.s32.f32 %v955_v13 }
 0x28a   : > { %v935_v5 = vcvt.s32.f32 %v933_v2  ;;  %v934_v10 = vcvt.s32.f32 %v932_v6 }
 0x2f1   : > { %v847_v20 = vpop.permute.xlu1 %846 }
 0x2f2   : > { %v852_v21 = vsub.f32 %v1749_v12, %v847_v20  ;;  %v979_v20 = vcvt.s32.f32 %v977_v16 }
 0x2f4   : > { %v854_v22 = vmul.f32 1.442695, %v852_v21 }
 0x2f5   : > { %v849_v23 = vpop.permute.xlu1 %848 }
 0x2f6   : > { %1421 = vpow2.f32 %v854_v22  ;;  %v853_v24 = vsub.f32 %v1754_v15, %v849_v23 }
 0x2f8   : > { %v856_v25 = vmul.f32 1.442695, %v853_v24 }
 0x2fa   : > { %1423 = vpow2.f32 %v856_v25 }
 0x2fb   : > { %1425 = vpow2.f32 %v840_v29 }
 0x2fc   : > { %1427 = vpow2.f32 %v842_v31 }
 0x303   : > { %v1422_v26 = vpop.eup %1421 }
 0x304   : > { %860 = vrot.lane.b32.xlu0 %v1422_v26, %s1558_s21  ;;  %v1561_v26 = vmov 0.0  }
 0x305   : > { %v1249_v29 = vsel %vm823_vm1, 1.0, %v1561_v26 }
 0x307   : > { %v1424_v27 = vpop.eup %1423 }
 0x308   : > { %862 = vrot.lane.b32.xlu1 %v1424_v27, %s1558_s21  ;;  %v1426_v32 = vpop.eup %1425  ;;  %v1248_v27 = vsel %vm822_vm3, 1.0, %v1561_v26 }
 0x309   : > { %v1428_v35 = vpop.eup %1427 }
 0x376   : > { %v861_v33 = vpop.permute.xlu0 %860 }
 0x377   : > { %v866_v34 = vadd.f32 %v1426_v32, %v861_v33 }
 0x379   : > { %1429 = vlog2.f32 %v866_v34 }
 0x37a   : > { %v863_v36 = vpop.permute.xlu1 %862 }
 0x37b   : > { %v867_v37 = vadd.f32 %v1428_v35, %v863_v36 }
 0x37d   : > { %1431 = vlog2.f32 %v867_v37 }
 0x386   : > { %v1430_v38 = vpop.eup %1429 }
 0x387   : > { %v869_v39 = vmul.f32 0.6931472, %v1430_v38 }
 0x389   : > { %v1769_v40 = vadd.f32 %v869_v39, %v836_v17  ;;  %v956_v17 = vcvt.s32.f32 %v954_v11 }
 0x38a   : > { %v1432_v41 = vpop.eup %1431 }
 0x38b   : > { %v871_v42 = vmul.f32 0.6931472, %v1432_v41  ;;  %878 = vrot.lane.b32.xlu0 %v1769_v40, %s1559_s13  ;;  %v886_v21 = vsub.f32 %v1749_v12, %v1769_v40 }
 0x38d   : > { %v1773_v43 = vadd.f32 %v871_v42, %v837_v19  ;;  %v978_v19 = vcvt.s32.f32 %v976_v14 }
 0x38f   : > { %880 = vrot.lane.b32.xlu1 %v1773_v43, %s1559_s13  ;;  %v887_v25 = vsub.f32 %v1754_v15, %v1773_v43 }
 0x3fd   : > { %v879_v44 = vpop.permute.xlu0 %878 }
 0x3fe   : > { %v884_v46 = vsub.f32 %v1749_v12, %v879_v44 }
 0x400   : > { %890 = vrot.lane.b32.xlu0 %v884_v46, %s1558_s21 }
 0x401   : > { %v881_v48 = vpop.permute.xlu1 %880 }
 0x402   : > { %v885_v52 = vsub.f32 %v1754_v15, %v881_v48 }
 0x404   : > { %892 = vrot.lane.b32.xlu1 %v885_v52, %s1558_s21 }
 0x41f   : > { %938 = vadd.xlane.f32.xlu0 %v935_v5 }
 0x423   : > { %936 = vadd.xlane.f32.xlu0 %v934_v10 }
 0x427   : > { %958 = vadd.xlane.f32.xlu0 %v956_v17  ;;  %v996_v17 = vand.u32 127, %v405_v50 }
 0x428   : > { %960 = vadd.xlane.f32.xlu1 %v957_v18 }
 0x429   : > { %vm997_vm12 = vcmp.eq.s32.totalorder %v996_v17, 0  ;;  %vm1003_vm13 = vcmp.eq.s32.totalorder %v996_v17, 1  ;;  %vm1007_vm14 = vcmp.eq.s32.totalorder %v996_v17, 2 }
 0x42b   : > { %980 = vadd.xlane.f32.xlu0 %v978_v19 }
 0x42c   : > { %982 = vadd.xlane.f32.xlu1 %v979_v20 }
 0x472   : > { %v891_v22 = vpop.permute.xlu0 %890 }
 0x473   : > { %v896_v23 = vsel %vm874_vm10, %v891_v22, %v886_v21 }
 0x474   : > { %v898_v24 = vsub.f32 0.0, %v896_v23 }
 0x476   : > { %v893_v28 = vpop.permute.xlu1 %892  ;;  %v900_v31 = vmul.f32 %v1248_v27, %v898_v24 }
 0x477   : > { %v897_v30 = vsel %vm875_vm11, %v893_v28, %v887_v25 }
 0x478   : > { %v899_v32 = vsub.f32 0.0, %v897_v30  ;;  %v903_v34 = vsel %vm902_vm9, %v900_v31, 0.0 }
 0x47a   : > { %v901_v33 = vmul.f32 %v1249_v29, %v899_v32 }
 0x47c   : > { %v904_v12 = vsel %vm902_vm9, %v901_v33, 0.0 }
 0x47d   : > { %v905_v35 = vadd.f32 %v904_v12, %v903_v34 }
 0x47f   : > { %906 = vadd.xlane.f32.xlu1 %v905_v35 }
 0x4a8   : > { %v939_v36 = vpop.xlane.xlu0 %938 }
 0x4a9   : > { %v941_v41 = vcvt.f32.s32 %v939_v36 }
 0x4ab   : > { %v942_v46 = vshll.u32 %v941_v41, 16 }
 0x4ac   : > { %v937_v37 = vpop.xlane.xlu0 %936 }
 0x4ad   : > { %v940_v44 = vcvt.f32.s32 %v937_v37 }
 0x4af   : > { %v943_v52 = vadd.s32 %v942_v46, %v940_v44 }
 0x4b0   : > { %v959_v15 = vpop.xlane.xlu0 %958 }
 0x4b1   : > { %v961_v38 = vpop.xlane.xlu1 %960  ;;  %v962_v49 = vcvt.f32.s32 %v959_v15  ;;  %v944_v55 = vrot.slane %v943_v52, 4 }
 0x4b2   : > { %v963_v40 = vcvt.f32.s32 %v961_v38 }
 0x4b3   : > { %v945_v57 = vadd.s32 %v944_v55, %v943_v52 }
 0x4b4   : > { %v981_v43 = vpop.xlane.xlu0 %980  ;;  %v964_v45 = vshll.u32 %v963_v40, 16 }
 0x4b5   : > { %v983_v39 = vpop.xlane.xlu1 %982  ;;  %v984_v48 = vcvt.f32.s32 %v981_v43  ;;  %v946_v61 = vrot.slane %v945_v57, 2 }
 0x4b6   : > { %v985_v42 = vcvt.f32.s32 %v983_v39  ;;  %v965_v53 = vadd.s32 %v964_v45, %v962_v49 }
 0x4b7   : > { %v947_v2 = vadd.s32 %v946_v61, %v945_v57 }
 0x4b8   : > { %v986_v47 = vshll.u32 %v985_v42, 16  ;;  %v966_v56 = vrot.slane %v965_v53, 4 }
 0x4b9   : > { %v948_v7 = vrot.slane %v947_v2, 1 }
 0x4ba   : > { %v987_v54 = vadd.s32 %v986_v47, %v984_v48  ;;  %v967_v58 = vadd.s32 %v966_v56, %v965_v53 }
 0x4bb   : > { %v949_v13 = vadd.s32 %v948_v7, %v947_v2 }
 0x4bc   : > { %v988_v51 = vrot.slane %v987_v54, 4  ;;  %v968_v63 = vrot.slane %v967_v58, 2 }
 0x4be   : > { %v989_v59 = vadd.s32 %v988_v51, %v987_v54  ;;  %v969_v4 = vadd.s32 %v968_v63, %v967_v58 }
 0x4c0   : > { %v990_v0 = vrot.slane %v989_v59, 2  ;;  %v970_v9 = vrot.slane %v969_v4, 1 }
 0x4c2   : > { %v991_v5 = vadd.s32 %v990_v0, %v989_v59  ;;  %v971_v14 = vadd.s32 %v970_v9, %v969_v4 }
 0x4c4   : > { %v992_v10 = vrot.slane %v991_v5, 1 }
 0x4c6   : > { %v993_v16 = vadd.s32 %v992_v10, %v991_v5 }
 0x508   : > { %v907_v60 = vpop.xlane.xlu1 %906 }
 0x509   : > { %v908_v62 = vrot.slane %v907_v60, 4 }
 0x50b   : > { %v909_v1 = vadd.f32 %v908_v62, %v907_v60 }
 0x50d   : > { %v910_v3 = vrot.slane %v909_v1, 2 }
 0x50f   : > { %v911_v6 = vadd.f32 %v910_v3, %v909_v1 }
 0x511   : > { %v912_v8 = vrot.slane %v911_v6, 1 }
 0x513   : > { %v913_v11 = vadd.f32 %v912_v8, %v911_v6 }
 0x515   : > { %1277 = vpush %v913_v11 }
 0x516   : > { %1279 = vpush %v949_v13 }
 0x517   : > { %1281 = vpush %v971_v14 }
 0x518   : > { %1283 = vpush %v993_v16 }
 0x546   : > { %s1278_s19 = spop %1277 }
 0x547   : > { %v998_v18 = vstv %s1278_s19  ;;  %s1280_s20 = spop %1279 }
 0x548   : > { %v999_v50 = vsel %vm997_vm12, %v998_v18, 0.0  ;;  %v1001_v19 = vstv %s1280_s20  ;;  %s1282_s21 = spop %1281 }
 0x549   : > { %1000 = vst [vmem:[%s342_s25] sm:$0x1] %v999_v50  ;;  %v1002_v20 = vsel %vm997_vm12, %v1001_v19, 0  ;;  %v1004_v21 = vstv %s1282_s21  ;;  %s1824_s13 = spop %1283  ;;  %s1562_s25 = smov [#allocation5]  }
 0x54a   : > { %v1005_v22 = vsel %vm1003_vm13, %v1004_v21, 0  ;;  %v1008_v23 = vstv %s1824_s13  ;;  %s1463_s17 = sshll.u32 %s1562_s25, 4  ;;  %s1464_s17 = int_to_ptr.vmem [resolvable:$false] %s1463_s17 }
 0x54b   : > { %s1465_s19 = scalar_lea.vmem %s1464_s17, 32  ;;  %p1466_p11 = scmp.lt.s32.totalorder %s1822_s10, %s1464_s17 }
 0x54c   : > { %p1467_p12 = scmp.lt.s32.totalorder %s1465_s19, %s1459_s12 }
 0x54e   : > { %p1468_p13 = por %p1467_p12, %p1466_p11 }
 0x550   : > { %p1469_p0 = pnand %p1468_p13, %p1462_p10 }
 0x552   : > { %1472 = shalt.err (!%p1469_p0)
}
 0x553   : > { %s1473_s20 = scalar_lea.hbm %s1820_s18, 16  ;;  %s1477_s25 = scalar_lea.hbm %s1898_s7, 32 }
 0x554   : > { %p1474_p1 = scmp.ne.s32.totalorder %s1820_s18, %s1473_s20  ;;  %p1478_p4 = scmp.lt.s32.totalorder %s1820_s18, %s1898_s7 }
 0x555   : > { %p1479_p7 = scmp.lt.s32.totalorder %s1477_s25, %s1473_s20 }
 0x556   : > { %p1475_p2 = pnand %p1474_p1, %p1647_p5 }
 0x557   : > { %p1480_p6 = por %p1479_p7, %p1478_p4 }
 0x558   : > { %p1476_p3 = pneg %p1475_p2 }
 0x55a   : > { %p1481_p8 = pnand %p1480_p6, %p1476_p3 }
 0x55c   : > { %1484 = shalt.err (!%p1481_p8)
}
 0x55d   : > { %1289 = dma.vmem_to_hbm [thread:$0]  (%p1647_p5), %s1822_s10, 16, %s1820_s18, %s1018_s9   ;;  %v1006_v24 = vadd.s32 %v1005_v22, %v1002_v20  ;;  %v1009_v25 = vsel %vm1007_vm14, %v1008_v23, 0 }
 0x55e   : > { %s1049_s12 = scalar_lea.hbm %s1899_s8, %s1778_s22  ;;  %s1906_s17 = scalar_lea.vmem [#allocation6], %s1812_s26 }
 0x55f   : > { %v1010_v26 = vadd.s32 %v1009_v25, %v1006_v24  ;;  %s1022_s19 = scalar_lea.sflag [#allocation7], %s1812_s26  ;;  %s1485_s20 = scalar_lea.vmem %s1052_s24, 16 }
 0x560   : > { %p1486_p9 = scmp.ne.s32.totalorder %s1052_s24, %s1485_s20  ;;  %s1563_s21 = smov [#allocation6]  }
 0x561   : > { %1011 = vst [vmem:[%s1906_s17] sm:$0x1] %v1010_v26  ;;  %s1489_s13 = sshll.u32 %s1563_s21, 4  ;;  %s1490_s13 = int_to_ptr.vmem [resolvable:$false] %s1489_s13 }
 0x562   : > { %p1487_p10 = pnand %p1486_p9, %p1647_p5  ;;  %s1491_s10 = scalar_lea.vmem %s1490_s13, 32 }
 0x563   : > { %p1492_p12 = scmp.lt.s32.totalorder %s1052_s24, %s1490_s13  ;;  %p1493_p13 = scmp.lt.s32.totalorder %s1491_s10, %s1485_s20 }
 0x564   : > { %p1488_p11 = pneg %p1487_p10 }
 0x565   : > { %p1494_p0 = por %p1493_p13, %p1492_p12 }
 0x567   : > { %p1495_p1 = pnand %p1494_p0, %p1488_p11 }
 0x569   : > { %1498 = shalt.err (!%p1495_p1)
}
 0x56a   : > { %s1499_s18 = scalar_lea.hbm %s1049_s12, 16  ;;  %s1503_s9 = scalar_lea.hbm %s1899_s8, 32 }
 0x56b   : > { %p1500_p2 = scmp.ne.s32.totalorder %s1049_s12, %s1499_s18  ;;  %p1504_p7 = scmp.lt.s32.totalorder %s1049_s12, %s1899_s8 }
 0x56c   : > { %p1505_p6 = scmp.lt.s32.totalorder %s1503_s9, %s1499_s18 }
 0x56d   : > { %p1501_p3 = pnand %p1500_p2, %p1647_p5 }
 0x56e   : > { %p1506_p8 = por %p1505_p6, %p1504_p7 }
 0x56f   : > { %p1502_p4 = pneg %p1501_p3 }
 0x571   : > { %p1507_p9 = pnand %p1506_p8, %p1502_p4 }
 0x573   : > { %1510 = shalt.err (!%p1507_p9)
}
 0x574   : > { %1290 = dma.vmem_to_hbm [thread:$0]  (%p1647_p5), %s1052_s24, 16, %s1049_s12, %s1022_s19  }
 0x575 PF: > { %p1306_p10 = scmp.ge.s32.totalorder %s1553_s30, 2  ;;  %s1071_s23 = sand.u32 1, %s1541_s27  }
 0x576   : > { %p1907_p11 = scmp.ne.s32.totalorder %s1903_s16, 0  ;;  %s1072_s17 = scalar_lea.sflag [#allocation4], %s1071_s23 }
 0x578   : > { %p1298_p12 = pnand %p1306_p10, %p1907_p11 }
 0x57a   : > { %p1299_p13 = pneg %p1298_p12 }
 0x57c   : > { %1532 = dma.done.wait (%p1299_p13), %s1072_s17, 16  }
 0x57d   : > { %1534 = vsyncadd (%p1299_p13), %s1072_s17, 4294967280  ;;  %s1080_s20 = scalar_lea.sflag [#allocation7], %s1071_s23 }
 0x57e   : > { %1536 = dma.done.wait (%p1299_p13), %s1080_s20, 16  }
 0x57f   : > { %1538 = vsyncadd (%p1299_p13), %s1080_s20, 4294967280  ;;  %p23_p5 = scmp.ge.s32.totalorder %s1634_s11, 4   ;;  %s1908_s27 = smov %s1545_s28 }
 0x580   : > { %s1909_s28 = smov %s1549_s29  ;;  %s1910_s29 = smov %s1645_s14 }
 0x581   : > { %s1911_s30 = smov %s1634_s11  ;;  %25 = sbr.rel (!%p23_p5) target bundleno = 8 (0x8), region = 116 }
 0x586   :  { %1084 = vsyncpa [#allocation3], 1 }
 0x587   :  { %1086 = vsyncpa [#allocation3 + $0x1], 1 }
 0x588   :  { %1087 = vsyncpa [#allocation4], 1 }
 0x589   :  { %1089 = vsyncpa [#allocation4 + $0x1], 1 }
 0x58a   :  { %1090 = vsyncpa [#allocation7], 1 }
 0x58b   :  { %1092 = vsyncpa [#allocation7 + $0x1], 1 }

</bundles_post_ra>
